<compile_context>
chip_gen: v5e
topology: v5e:2x2
jax: 0.10.0
libtpu: 0.0.40
codegen_flags: <defaults>
</compile_context>

<pallas_src>
import numpy as np
import jax
import jax.numpy as jnp
from jax.experimental import pallas as pl
from jax.experimental.pallas import tpu as pltpu

_BIG = 1e30  # plain Python float: lowers to a literal, never a captured constant


def _prep_modifier_kernel(prep_ref, logo_ref, out_ref):
    # prep_ref: (P*V_pad, TL) f32, p-outer rows (row = p*V_pad + k); invalid -> -_BIG
    # logo_ref: (V_pad, TL)   f32; invalid-k rows -> +_BIG, invalid-t columns -> 0
    # out_ref : (1, 8, 128)   f32 per-grid-step partial loss (scalar, replicated)
    pv, tl = prep_ref.shape
    v_pad = logo_ref.shape[0]
    p_cnt = pv // v_pad

    logo = logo_ref[...]                                       # (V_pad, TL)
    acc = jnp.zeros((1, tl), jnp.float32)                      # lane accumulator
    for p in range(p_cnt):                                     # tiny static loop (P = 2)
        # 8-aligned *ref* slice (V_pad is a multiple of 8): no VMEM relayout copy.
        prep_p = prep_ref[p * v_pad:(p + 1) * v_pad, :]        # (V_pad, TL)
        rhs = jnp.maximum(prep_p, logo)                        # (V_pad, TL)

        # min-excluding-self over the predicate (sublane) axis via min / min-of-rest.
        # Tie handling and the "+1e4 diagonal" term are redundant under the relu
        # because prep_p <= rhs always (verified against the numpy reference).
        m1 = jnp.min(rhs, axis=0, keepdims=True)               # (1, TL)
        is_min = rhs == m1
        m_excl = jnp.min(jnp.where(is_min, _BIG, rhs), axis=0, keepdims=True)
        excl_min = jnp.where(is_min, m_excl, m1)               # min_{j != k} rhs[j]

        term = jnp.maximum(prep_p - excl_min, 0.0)             # (V_pad, TL)
        acc = acc + jnp.sum(term, axis=0, keepdims=True)       # XLU sublane reduce

    partial = jnp.sum(acc)                                     # one cross-lane reduce
    out_ref[...] = jnp.zeros((1, 8, 128), jnp.float32) + partial


def _pick_lane_tile(p_cnt, v_pad, n_lanes, budget_bytes=24 << 20):
    """Lane-chunk size (multiple of 128): double-buffered inputs (x2) plus ~1x working
    set are kept under `budget_bytes`, well inside the 48 MiB scoped-VMEM window on
    v5e/v6e and v7x (64 MiB physical)."""
    row_bytes = (p_cnt * v_pad + v_pad) * 4                    # f32 bytes per lane column
    tl = (budget_bytes // (3 * row_bytes)) // 128 * 128
    tl = int(max(128, min(tl, 32768)))
    total = ((n_lanes + 127) // 128) * 128
    if total >= 256:
        # guarantee >= 2 grid steps so the "parallel" axis shards across v7x's 2 TCs
        tl = min(tl, max(128, (total // 2) // 128 * 128))
    return int(min(tl, total))


def prep_modifier_loss(log_pa, v_label, v_l, orig_l, prep_label_idx, o_idx=0,
                       lane_tile=None):
    """Returns (loss / num_prop, None), like PrepModifierLoss.forward
    (use_gold_predicate == 1)."""
    B, S, _, C = log_pa.shape
    V = v_label.shape[1]
    P = len(prep_label_idx)
    V_pad = max(8, ((V + 7) // 8) * 8)

    v_l = v_l.astype(jnp.int32)
    orig_l = orig_l.astype(jnp.int32)

    # ---- JAX glue: channel-select, gold-predicate gather, masks folded into data ----
    kmask = jnp.arange(V, dtype=jnp.int32)[None, :] < v_l[:, None]        # (B, V)
    tmask = jnp.arange(S, dtype=jnp.int32)[None, :] < orig_l[:, None]     # (B, S)

    cols = jnp.asarray([int(o_idx)] + [int(c) for c in prep_label_idx], dtype=jnp.int32)
    sel = jnp.take(log_pa, cols, axis=-1)                                 # (B, S, S, P+1)

    v_safe = jnp.where(kmask, v_label.astype(jnp.int32), 0)
    gathered = sel[jnp.arange(B)[:, None], v_safe].astype(jnp.float32)    # (B, V, S, P+1)

    logo = gathered[..., 0]                                               # (B, V, S)
    prep = gathered[..., 1:]                                              # (B, V, S, P)

    valid = kmask[:, :, None] & tmask[:, None, :]                         # (B, V, S)
    prep = jnp.where(valid[..., None], prep, -_BIG)                       # invalid -> -BIG
    logo = jnp.where(tmask[:, None, :], logo, 0.0)                        # invalid t -> 0
    logo = jnp.where(kmask[:, :, None], logo, _BIG)                       # invalid k -> +BIG

    # ---- lane-dense relayout: rows = (p, k) predicate slots, lanes = flattened (b, t) ----
    prep = jnp.transpose(prep, (3, 1, 0, 2))                              # (P, V, B, S)
    prep = jnp.pad(prep, ((0, 0), (0, V_pad - V), (0, 0), (0, 0)),
                   constant_values=-_BIG)
    prep = prep.reshape(P * V_pad, B * S)
    logo = jnp.transpose(logo, (1, 0, 2))                                 # (V, B, S)
    logo = jnp.pad(logo, ((0, V_pad - V), (0, 0), (0, 0)), constant_values=_BIG)
    logo = logo.reshape(V_pad, B * S)

    # ---- lane chunking (multiple of 128) + padding; padded columns contribute 0 ----
    N = B * S
    tl = int(lane_tile) if lane_tile is not None else _pick_lane_tile(P, V_pad, N)
    assert tl % 128 == 0
    num_chunks = -(-N // tl)
    N_pad = num_chunks * tl
    if N_pad != N:
        prep = jnp.pad(prep, ((0, 0), (0, N_pad - N)), constant_values=-_BIG)
        logo = jnp.pad(logo, ((0, 0), (0, N_pad - N)), constant_values=_BIG)

    # ---- Pallas kernel: one grid step per lane chunk, per-chunk partial outputs ----
    partials = pl.pallas_call(
        _prep_modifier_kernel,
        out_shape=jax.ShapeDtypeStruct((num_chunks, 8, 128), jnp.float32),
        grid=(num_chunks,),
        in_specs=[
            pl.BlockSpec((P * V_pad, tl), lambda i: (0, i)),
            pl.BlockSpec((V_pad, tl), lambda i: (0, i)),
        ],
        out_specs=pl.BlockSpec((1, 8, 128), lambda i: (i, 0, 0)),
        compiler_params=pltpu.CompilerParams(
            dimension_semantics=("parallel",),
            vmem_limit_bytes=48 * 1024 * 1024,
        ),
    )(prep, logo)

    loss = jnp.sum(partials[:, 0, 0])
    num_prop = jnp.sum(v_l).astype(jnp.float32)
    return (loss / num_prop).reshape(1), None


# ------------------------- pure-numpy reference (for checking) -------------------------
def _ref_loss(log_pa, v_label, v_l, orig_l, prep_label_idx, o_idx=0):
    log_pa = np.asarray(log_pa, dtype=np.float64)
    v_label = np.asarray(v_label)
    v_l = np.asarray(v_l)
    orig_l = np.asarray(orig_l)
    total = 0.0
    for i in range(log_pa.shape[0]):
        nv, L = int(v_l[i]), int(orig_l[i])
        v_i = v_label[i, :nv]
        lp = log_pa[i][v_i, :L][:, :, prep_label_idx]          # (nv, L, P)
        lo = log_pa[i][v_i, :L][:, :, o_idx:o_idx + 1]
        lo = np.broadcast_to(lo, lp.shape)
        rhs = np.maximum(lp, lo)
        rhs4 = np.broadcast_to(rhs[None], (nv,) + rhs.shape).copy()
        rhs4 = rhs4 + (np.eye(nv) * 10000.0)[:, :, None, None]
        rhs_min = rhs4.min(axis=1)
        total += np.maximum(lp - rhs_min, 0.0).sum()
    return total / float(v_l.sum())


if __name__ == "__main__":
    key = jax.random.PRNGKey(0)
    B, S, V = 3, 48, 4         # batch, source_l (padded seq len), max #predicates

    # Deterministic synthetic label map:
    #   0:'O' 1:'B-A0' 2:'B-AM-LOC' 3:'I-AM-LOC' 4:'B-AM-TMP' 5:'I-A0'
    # -> prep_label_idx = [2, 4], o_idx = 0
    prep_label_idx = [2, 4]
    o_idx = 0
    C = 6

    k1, _ = jax.random.split(key)
    log_pa = jax.nn.log_softmax(
        jax.random.normal(k1, (B, S, S, C), dtype=jnp.float32), axis=-1)

    v_label = jnp.array([[1, 4, 0, 0],
                         [0, 3, 5, 0],
                         [2, 6, 7, 1]], dtype=jnp.int32)       # predicate positions (padded)
    v_l = jnp.array([2, 3, 1], dtype=jnp.int32)                # #gold predicates per example
    orig_l = jnp.array([48, 30, 41], dtype=jnp.int32)          # original sequence lengths

    # Default heuristic picks TL=128 here -> 2 lane chunks: exercises the multi-step
    # "parallel" grid, V padding (4 -> 8 sublanes) and zero-contribution lane padding.
    loss, _ = prep_modifier_loss(log_pa, v_label, v_l, orig_l, prep_label_idx, o_idx)
    loss = jax.block_until_ready(loss)

    ref = _ref_loss(log_pa, v_label, v_l, orig_l, prep_label_idx, o_idx)
    assert np.allclose(np.asarray(loss)[0], ref, rtol=1e-4, atol=1e-5), (loss, ref)
    print("KERNEL_OK")
</pallas_src>

<mosaic_0001>
module attributes {stable_mosaic.version = 11 : i64} {
  func.func @_prep_modifier_kernel(%arg0: i32, %arg1: memref<16x128xf32, #tpu.memory_space<vmem>>, %arg2: memref<8x128xf32, #tpu.memory_space<vmem>>, %arg3: memref<1x8x128xf32, #tpu.memory_space<vmem>>) attributes {dimension_semantics = [#tpu.dimension_semantics<parallel>], iteration_bounds = array<i64: 2>, scalar_prefetch = 0 : i64, scratch_operands = 0 : i64, tpu.core_type = #tpu.core_type<tc>, window_params = [{transform_indices = @transform_0, window_bounds = array<i64: 16, 128>}, {transform_indices = @transform_1, window_bounds = array<i64: 8, 128>}, {transform_indices = @transform_2, window_bounds = array<i64: 1, 8, 128>}]} {
    %c0 = arith.constant 0 : index
    %c0_0 = arith.constant 0 : index
    %0 = vector.load %arg2[%c0, %c0_0] : memref<8x128xf32, #tpu.memory_space<vmem>>, vector<8x128xf32>
    %cst = arith.constant 0.000000e+00 : f32
    %1 = vector.broadcast %cst : f32 to vector<1x128xf32>
    %c0_1 = arith.constant 0 : index
    %c0_2 = arith.constant 0 : index
    %2 = vector.load %arg1[%c0_1, %c0_2] : memref<16x128xf32, #tpu.memory_space<vmem>>, vector<8x128xf32>
    %3 = arith.maximumf %2, %0 : vector<8x128xf32>
    %cst_3 = arith.constant dense<0x7F800000> : vector<128xf32>
    %4 = vector.multi_reduction <minimumf>, %3, %cst_3 [0] : vector<8x128xf32> to vector<128xf32>
    %5 = vector.shape_cast %4 : vector<128xf32> to vector<1x128xf32>
    %6 = vector.broadcast %5 : vector<1x128xf32> to vector<8x128xf32>
    %7 = arith.cmpf oeq, %3, %6 : vector<8x128xf32>
    %cst_4 = arith.constant 1.000000e+30 : f32
    %8 = vector.broadcast %cst_4 : f32 to vector<8x128xf32>
    %9 = arith.select %7, %8, %3 : vector<8x128xi1>, vector<8x128xf32>
    %cst_5 = arith.constant dense<0x7F800000> : vector<128xf32>
    %10 = vector.multi_reduction <minimumf>, %9, %cst_5 [0] : vector<8x128xf32> to vector<128xf32>
    %11 = vector.shape_cast %10 : vector<128xf32> to vector<1x128xf32>
    %12 = vector.shape_cast %11 : vector<1x128xf32> to vector<1x128xf32>
    %13 = vector.broadcast %12 : vector<1x128xf32> to vector<8x128xf32>
    %14 = vector.shape_cast %5 : vector<1x128xf32> to vector<1x128xf32>
    %15 = vector.broadcast %14 : vector<1x128xf32> to vector<8x128xf32>
    %16 = arith.select %7, %13, %15 : vector<8x128xi1>, vector<8x128xf32>
    %17 = arith.subf %2, %16 : vector<8x128xf32>
    %cst_6 = arith.constant 0.000000e+00 : f32
    %18 = vector.broadcast %cst_6 : f32 to vector<8x128xf32>
    %19 = arith.maximumf %17, %18 : vector<8x128xf32>
    %cst_7 = arith.constant dense<0.000000e+00> : vector<128xf32>
    %20 = vector.multi_reduction <add>, %19, %cst_7 [0] : vector<8x128xf32> to vector<128xf32>
    %21 = vector.shape_cast %20 : vector<128xf32> to vector<1x128xf32>
    %22 = arith.addf %1, %21 : vector<1x128xf32>
    %c8 = arith.constant 8 : index
    %c0_8 = arith.constant 0 : index
    %23 = vector.load %arg1[%c8, %c0_8] : memref<16x128xf32, #tpu.memory_space<vmem>>, vector<8x128xf32>
    %24 = arith.maximumf %23, %0 : vector<8x128xf32>
    %cst_9 = arith.constant dense<0x7F800000> : vector<128xf32>
    %25 = vector.multi_reduction <minimumf>, %24, %cst_9 [0] : vector<8x128xf32> to vector<128xf32>
    %26 = vector.shape_cast %25 : vector<128xf32> to vector<1x128xf32>
    %27 = vector.broadcast %26 : vector<1x128xf32> to vector<8x128xf32>
    %28 = arith.cmpf oeq, %24, %27 : vector<8x128xf32>
    %cst_10 = arith.constant 1.000000e+30 : f32
    %29 = vector.broadcast %cst_10 : f32 to vector<8x128xf32>
    %30 = arith.select %28, %29, %24 : vector<8x128xi1>, vector<8x128xf32>
    %cst_11 = arith.constant dense<0x7F800000> : vector<128xf32>
    %31 = vector.multi_reduction <minimumf>, %30, %cst_11 [0] : vector<8x128xf32> to vector<128xf32>
    %32 = vector.shape_cast %31 : vector<128xf32> to vector<1x128xf32>
    %33 = vector.shape_cast %32 : vector<1x128xf32> to vector<1x128xf32>
    %34 = vector.broadcast %33 : vector<1x128xf32> to vector<8x128xf32>
    %35 = vector.shape_cast %26 : vector<1x128xf32> to vector<1x128xf32>
    %36 = vector.broadcast %35 : vector<1x128xf32> to vector<8x128xf32>
    %37 = arith.select %28, %34, %36 : vector<8x128xi1>, vector<8x128xf32>
    %38 = arith.subf %23, %37 : vector<8x128xf32>
    %cst_12 = arith.constant 0.000000e+00 : f32
    %39 = vector.broadcast %cst_12 : f32 to vector<8x128xf32>
    %40 = arith.maximumf %38, %39 : vector<8x128xf32>
    %cst_13 = arith.constant dense<0.000000e+00> : vector<128xf32>
    %41 = vector.multi_reduction <add>, %40, %cst_13 [0] : vector<8x128xf32> to vector<128xf32>
    %42 = vector.shape_cast %41 : vector<128xf32> to vector<1x128xf32>
    %43 = arith.addf %22, %42 : vector<1x128xf32>
    %44 = vector.shape_cast %43 : vector<1x128xf32> to vector<1x1x128xf32>
    %cst_14 = arith.constant dense<0.000000e+00> : vector<1xf32>
    %45 = vector.multi_reduction <add>, %44, %cst_14 [1, 2] : vector<1x1x128xf32> to vector<1xf32>
    %46 = vector.shape_cast %45 : vector<1xf32> to vector<1x1x1xf32>
    %47 = vector.extract %46[0, 0, 0] : f32 from vector<1x1x1xf32>
    %cst_15 = arith.constant 0.000000e+00 : f32
    %48 = vector.broadcast %cst_15 : f32 to vector<1x8x128xf32>
    %49 = vector.broadcast %47 : f32 to vector<1x8x128xf32>
    %50 = arith.addf %48, %49 : vector<1x8x128xf32>
    %c0_16 = arith.constant 0 : index
    %c0_17 = arith.constant 0 : index
    %c0_18 = arith.constant 0 : index
    %51 = vector.load %arg3[%c0_16, %c0_17, %c0_18] : memref<1x8x128xf32, #tpu.memory_space<vmem>>, vector<1x8x128xf32>
    tpu.vector_store %arg3[%c0_16, %c0_17, %c0_18], %50 {strides = array<i32>} : memref<1x8x128xf32, #tpu.memory_space<vmem>>, vector<1x8x128xf32>,
    return
  }
  func.func @transform_0(%arg0: i32) -> (i32, i32) {
    %c0_i32 = arith.constant 0 : i32
    %c0_i32_0 = arith.constant 0 : i32
    return %c0_i32, %arg0 : i32, i32
  }
  func.func @transform_1(%arg0: i32) -> (i32, i32) {
    %c0_i32 = arith.constant 0 : i32
    %c0_i32_0 = arith.constant 0 : i32
    return %c0_i32, %arg0 : i32, i32
  }
  func.func @transform_2(%arg0: i32) -> (i32, i32, i32) {
    %c0_i32 = arith.constant 0 : i32
    %c0_i32_0 = arith.constant 0 : i32
    %c0_i32_1 = arith.constant 0 : i32
    return %arg0, %c0_i32, %c0_i32_0 : i32, i32, i32
  }
}

</mosaic_0001>

<bundles_post_ra>
// kernel: tpu_custom_call.1
= control target key start
LH: loop header
LB: loop body
LE: loop exit
PB: predicated region body
PF: predicated region fallthrough
CT: control target
= control target key end

     0   :  { %s771_s0 = inlined_call_operand.hbm [shape: f32[16,256], index: 0, kind: input, shape index: {}]   ;;  %s772_s1 = inlined_call_operand.hbm [shape: f32[8,256], index: 1, kind: input, shape index: {}]   ;;  %s773_s2 = inlined_call_operand.hbm [shape: f32[2,8,128], index: 2, kind: output, shape index: {}]  }
   0x1   :  { %774 = sst [smem:[#allocation11_spill]] %s771_s0 }
   0x2   :  { %7 = vsyncpa [#allocation3], 0 }
   0x3   :  { %9 = vsyncpa [#allocation3 + $0x1], 0 }
   0x4   :  { %10 = vsyncpa [#allocation6], 0 }
   0x5   :  { %12 = vsyncpa [#allocation6 + $0x1], 0 }
   0x6   :  { %13 = vsyncpa [#allocation4], 0 }
   0x7   :  { %15 = vsyncpa [#allocation4 + $0x1], 0  ;;  %s599_s9 = smov 0   ;;  %s601_s10 = smov 0  }
   0x8   :  { %s603_s11 = smov 0   ;;  %s605_s12 = smov 0  }
   0x9 LB: > { %s620_s13 = sadd.s32 4294967295, %s579_s12   ;;  %s378_s14 = sadd.s32 4294967294, %s579_s12   ;;  %s579_s12 = sphi %s605_s12, %s785_s12   ;;  %s575_s11 = sphi %s603_s11, %s784_s11   ;;  %s571_s10 = sphi %s601_s10, %s783_s10   ;;  %s567_s9 = sphi %s599_s9, %s782_s9  }
   0xa   : > { %s624_s15 = sadd.s32 1, %s579_s12   ;;  %s28_s16 = sadd.s32 1, %s575_s11 }
   0xb   : > { %s25_s17 = ssub.s32 %s579_s12, %s624_s15  ;;  %p35_p0 = scmp.ne.s32.totalorder %s575_s11, %s571_s10 }
   0xc   : > { %p26_p1 = scmp.eq.s32.totalorder %s25_s17, 0  ;;  %p36_p2 = scmp.eq.s32.totalorder %s579_s12, 0 }
   0xd   : > { %p41_p3 = scmp.ne.s32.totalorder %s571_s10, %s567_s9  ;;  %p42_p4 = scmp.eq.s32.totalorder %s620_s13, 0 }
   0xe   : > { %s636_s18 = scalar_select %p26_p1, %s575_s11, %s28_s16  }
   0xf   : > { %p638_p5 = por %p36_p2, %p35_p0  ;;  %p642_p6 = por %p42_p4, %p41_p3 }
  0x10   : > { %p91_p7 = scmp.eq.s32.totalorder %s620_s13, 1  ;;  %p97_p8 = scmp.eq.s32.totalorder %s378_s14, 1 }
  0x11   : > { %p380_p9 = scmp.ge.s32.totalorder %s579_s12, 2  ;;  %p412_p10 = scmp.lt.s32.totalorder %s579_s12, 2 }
  0x12   : > { %p649_p11 = por %p91_p7, %p35_p0  ;;  %p653_p12 = por %p97_p8, %p41_p3 }
  0x13   : > { %s658_s23 = sand.u32 1, %s575_s11   ;;  %s382_s24 = sshll.u32 %s579_s12, 3 }
  0x14   : > { %s381_s25 = sshll.u32 %s658_s23, 4  ;;  %s779_s0 = sld [smem:[#allocation11_spill]] }
  0x15   : > { %s121_s30 = scalar_lea.vmem [#allocation2], %s381_s25  ;;  %p669_p13 = pnand %p412_p10, %p638_p5 }
  0x16   : > { %s128_s3 = sshll.u32 %s121_s30, 4  ;;  %p385_p0 = scmp.ge.s32.totalorder %s579_s12, 1  ;;  %s129_s3 = int_to_ptr.vmem [resolvable:$true] %s128_s3 }
  0x17   : > { %s118_s5 = scalar_lea.sflag [#allocation3], %s658_s23  ;;  %p453_p2 = pneg %p669_p13 }
  0x1a   : > { %s125_s28 = scalar_lea.hbm %s779_s0, %s382_s24  ;;  %s456_s16 = scalar_lea.hbm %s779_s0, 32 }
  0x1b   : > { %s126_s29 = sshll.u32 %s125_s28, 4  ;;  %s127_s29 = int_to_ptr.hbm [resolvable:$true] %s126_s29 }
  0x1c   : > { %s449_s6 = sshra.s32 %s127_s29, 4  ;;  %s450_s6 = int_to_ptr.hbm [resolvable:$true] %s449_s6 }
  0x1d   : > { %s451_s7 = scalar_lea.hbm %s450_s6, 16  ;;  %p457_p5 = scmp.lt.s32.totalorder %s450_s6, %s779_s0 }
  0x1e   : > { %p452_p1 = scmp.ne.s32.totalorder %s450_s6, %s451_s7  ;;  %p458_p7 = scmp.lt.s32.totalorder %s456_s16, %s451_s7 }
  0x20   : > { %p454_p3 = pnand %p453_p2, %p452_p1  ;;  %p459_p8 = por %p458_p7, %p457_p5 }
  0x22   : > { %p455_p4 = pneg %p454_p3 }
  0x24   : > { %p460_p10 = pnand %p459_p8, %p455_p4 }
  0x26   : > { %463 = shalt.err (!%p460_p10)
}
  0x27   : > { %s581_s25 = smov 256   ;;  %s582_s26 = smov 128  }
  0x28   : > { %s583_s27 = smov 8   ;;  %p155_p1 = scmp.lt.s32.totalorder %s579_s12, 3 }
  0x29   : > { %404 = dma.hbm_to_vmem [thread:$0]  (!%p669_p13), %s127_s29, 256, %s129_s3, %s118_s5, %s581_s25, %s582_s26, %s583_s27  }
  0x2a   : > { %s383_s28 = sshll.u32 %s658_s23, 3  ;;  %s146_s7 = scalar_lea.hbm %s772_s1, %s382_s24 }
  0x2b   : > { %p697_p3 = pnand %p385_p0, %p155_p1  ;;  %s148_s14 = sshll.u32 %s146_s7, 4  ;;  %s149_s14 = int_to_ptr.hbm [resolvable:$true] %s148_s14 }
  0x2c   : > { %s142_s16 = scalar_lea.vmem [#allocation5], %s383_s28  ;;  %s139_s19 = scalar_lea.sflag [#allocation6], %s658_s23 }
  0x2d   : > { %s150_s17 = sshll.u32 %s142_s16, 4  ;;  %s479_s0 = sshra.s32 %s149_s14, 4  ;;  %s151_s17 = int_to_ptr.vmem [resolvable:$true] %s150_s17  ;;  %s480_s0 = int_to_ptr.hbm [resolvable:$true] %s479_s0 }
  0x2e   : > { %s481_s29 = scalar_lea.hbm %s480_s0, 8  ;;  %s486_s5 = scalar_lea.hbm %s772_s1, 16 }
  0x2f   : > { %p482_p4 = scmp.ne.s32.totalorder %s480_s0, %s481_s29  ;;  %p487_p0 = scmp.lt.s32.totalorder %s480_s0, %s772_s1 }
  0x30   : > { %p488_p8 = scmp.lt.s32.totalorder %s486_s5, %s481_s29 }
  0x31   : > { %p484_p5 = pnand %p482_p4, %p453_p2 }
  0x32   : > { %p489_p10 = por %p488_p8, %p487_p0 }
  0x33   : > { %p485_p7 = pneg %p484_p5 }
  0x35   : > { %p490_p1 = pnand %p489_p10, %p485_p7 }
  0x37   : > { %493 = shalt.err (!%p490_p1)
}
  0x38   : > { %407 = dma.hbm_to_vmem [thread:$0]  (!%p669_p13), %s149_s14, 128, %s151_s17, %s139_s19  }
  0x39   : > { %159 = sbr.rel (%p697_p3) target bundleno = 298 (0x12a), region = 28  ;;  %s716_s23 = sand.u32 (!%p697_p3), 1, %s571_s10  }
  0x3a   : > { %s386_s27 = sshll.u32 (!%p697_p3), %s716_s23, 4  ;;  %s162_s28 = scalar_lea.sflag (!%p697_p3), [#allocation3], %s716_s23 }
  0x3b   : > { %s165_s30 = scalar_lea.vmem (!%p697_p3), [#allocation2], %s386_s27 }
  0x3e   : > { %554 = dma.done.wait (%p642_p6), %s162_s28, 256  }
  0x3f   : > { %556 = vsyncadd (%p642_p6), %s162_s28, 4294967040  ;;  %s387_s0 = sshll.u32 %s716_s23, 3  ;;  %s172_s4 = scalar_lea.sflag [#allocation6], %s716_s23 }
  0x40   : > { %s175_s6 = scalar_lea.vmem [#allocation5], %s387_s0 }
  0x41   : > { %558 = dma.done.wait (%p642_p6), %s172_s4, 128  }
  0x42   : > { %560 = vsyncadd (%p642_p6), %s172_s4, 4294967168  ;;  %v202_v0 = vld [vmem:[%s175_s6] sm:$0xff]  ;;  %v229_v2 = vld [vmem:[%s165_s30 + $0x8] sm:$0xff]  ;;  %vm255_vm2 = vcmask 1040384   ;;  %s390_s20 = sshll.u32 %s620_s13, 3  ;;  %s201_s16 = scalar_lea.vmem [#allocation7], %s387_s0 }
  0x43   : > { %v203_v1 = vld [vmem:[%s165_s30] sm:$0xff]  ;;  %v230_v4 = vmax.f32 %v229_v2, %v202_v0  ;;  %s280_s14 = scalar_lea.hbm %s773_s2, %s390_s20  ;;  %s282_s17 = sshll.u32 %s201_s16, 4  ;;  %s283_s17 = int_to_ptr.vmem [resolvable:$true] %s282_s17 }
  0x44   : > { %v204_v3 = vmax.f32 %v203_v1, %v202_v0  ;;  %s284_s19 = sshll.u32 %s280_s14, 4  ;;  %s270_s24 = scalar_lea.sflag [#allocation4], %s716_s23  ;;  %s285_s19 = int_to_ptr.hbm [resolvable:$true] %s284_s19 }
  0x45   : > { %v231_v6 = vrot.slane %v230_v4, 4  ;;  %s523_s3 = sshra.s32 %s285_s19, 4  ;;  %s529_s26 = scalar_lea.hbm %s773_s2, 16  ;;  %s524_s3 = int_to_ptr.hbm [resolvable:$true] %s523_s3 }
  0x46   : > { %v205_v5 = vrot.slane %v204_v3, 4  ;;  %s525_s5 = scalar_lea.hbm %s524_s3, 8  ;;  %p530_p3 = scmp.lt.s32.totalorder %s524_s3, %s773_s2 }
  0x47   : > { %v232_v8 = vmin.f32 %v230_v4, %v231_v6  ;;  %p526_p6 = scmp.ne.s32.totalorder %s524_s3, %s525_s5  ;;  %p531_p4 = scmp.lt.s32.totalorder %s529_s26, %s525_s5 }
  0x48   : > { %v206_v7 = vmin.f32 %v204_v3, %v205_v5 }
  0x49   : > { %v233_v10 = vrot.slane %v232_v8, 2  ;;  %p527_p13 = pnand %p526_p6, %p649_p11  ;;  %p532_p5 = por %p531_p4, %p530_p3 }
  0x4a   : > { %v207_v9 = vrot.slane %v206_v7, 2 }
  0x4b   : > { %v234_v12 = vmin.f32 %v232_v8, %v233_v10  ;;  %p528_p2 = pneg %p527_p13 }
  0x4c   : > { %v208_v11 = vmin.f32 %v206_v7, %v207_v9 }
  0x4d   : > { %v235_v14 = vrot.slane %v234_v12, 1  ;;  %p533_p7 = pnand %p532_p5, %p528_p2 }
  0x4e   : > { %v209_v13 = vrot.slane %v208_v11, 1 }
  0x4f   : > { %v236_v16 = vmin.f32 %v234_v12, %v235_v14 }
  0x50   : > { %v210_v15 = vmin.f32 %v208_v11, %v209_v13 }
  0x51   : > { %vm237_vm1 = vcmp.eq.f32.partialorder %v230_v4, %v236_v16 }
  0x52   : > { %vm211_vm0 = vcmp.eq.f32.partialorder %v204_v3, %v210_v15  ;;  %v238_v18 = vsel %vm237_vm1, 1e+30, %v230_v4 }
  0x53   : > { %v212_v17 = vsel %vm211_vm0, 1e+30, %v204_v3  ;;  %v239_v20 = vrot.slane %v238_v18, 4 }
  0x54   : > { %v213_v19 = vrot.slane %v212_v17, 4 }
  0x55   : > { %v240_v22 = vmin.f32 %v238_v18, %v239_v20 }
  0x56   : > { %v214_v21 = vmin.f32 %v212_v17, %v213_v19 }
  0x57   : > { %v241_v24 = vrot.slane %v240_v22, 2 }
  0x58   : > { %v215_v23 = vrot.slane %v214_v21, 2 }
  0x59   : > { %v242_v26 = vmin.f32 %v240_v22, %v241_v24 }
  0x5a   : > { %v216_v25 = vmin.f32 %v214_v21, %v215_v23 }
  0x5b   : > { %v243_v28 = vrot.slane %v242_v26, 1 }
  0x5c   : > { %v217_v27 = vrot.slane %v216_v25, 1 }
  0x5d   : > { %v244_v30 = vmin.f32 %v242_v26, %v243_v28 }
  0x5e   : > { %v218_v29 = vmin.f32 %v216_v25, %v217_v27 }
  0x5f   : > { %v245_v32 = vsel %vm237_vm1, %v244_v30, %v236_v16 }
  0x60   : > { %v219_v31 = vsel %vm211_vm0, %v218_v29, %v210_v15  ;;  %v246_v34 = vsub.f32 %v229_v2, %v245_v32 }
  0x61   : > { %v220_v33 = vsub.f32 %v203_v1, %v219_v31 }
  0x62   : > { %v247_v36 = vmax.f32 %v246_v34, 0.0 }
  0x63   : > { %v221_v35 = vmax.f32 %v220_v33, 0.0 }
  0x64   : > { %v248_v38 = vrot.slane %v247_v36, 4 }
  0x65   : > { %v222_v37 = vrot.slane %v221_v35, 4 }
  0x66   : > { %v249_v40 = vadd.f32 %v248_v38, %v247_v36 }
  0x67   : > { %v223_v39 = vadd.f32 %v222_v37, %v221_v35 }
  0x68   : > { %v250_v42 = vrot.slane %v249_v40, 2 }
  0x69   : > { %v224_v41 = vrot.slane %v223_v39, 2 }
  0x6a   : > { %v251_v44 = vadd.f32 %v250_v42, %v249_v40 }
  0x6b   : > { %v225_v43 = vadd.f32 %v224_v41, %v223_v39 }
  0x6c   : > { %v252_v46 = vrot.slane %v251_v44, 1 }
  0x6d   : > { %v226_v45 = vrot.slane %v225_v43, 1 }
  0x6e   : > { %v253_v48 = vadd.f32 %v252_v46, %v251_v44 }
  0x6f   : > { %v227_v47 = vadd.f32 %v226_v45, %v225_v43 }
  0x71   : > { %v254_v49 = vadd.f32 %v253_v48, %v227_v47 }
  0x73   : > { %v256_v50 = vsel %vm255_vm2, %v254_v49, 0.0 }
  0x74   : > { %257 = vadd.xlane.f32.xlu0 %v256_v50 }
  0xe7   : > { %v258_v51 = vpop.xlane.xlu0 %257 }
  0xe8   : > { %v259_v52 = vrot.slane %v258_v51, 4 }
  0xea   : > { %v260_v53 = vadd.f32 %v259_v52, %v258_v51 }
  0xec   : > { %v261_v54 = vrot.slane %v260_v53, 2 }
  0xee   : > { %v262_v55 = vadd.f32 %v261_v54, %v260_v53 }
  0xf0   : > { %v263_v56 = vrot.slane %v262_v55, 1 }
  0xf2   : > { %v264_v57 = vadd.f32 %v263_v56, %v262_v55 }
  0xf4   : > { %393 = vpush %v264_v57 }
 0x125   : > { %s394_s29 = spop %393 }
 0x126   : > { %v266_v58 = vstv %s394_s29 }
 0x127   : > { %268 = vst [vmem:[%s201_s16] sm:$0xff] %v266_v58 }
 0x128   : > { %536 = shalt.err (!%p533_p7)
}
 0x129   : > { %399 = dma.vmem_to_hbm [thread:$0]  (%p649_p11), %s283_s17, 128, %s285_s19, %s270_s24  }
 0x12a PF: > { %s296_s23 = sand.u32 1, %s567_s9   ;;  %p409_p0 = pnand %p380_p9, %p653_p12 }
 0x12b   : > { %s297_s30 = scalar_lea.sflag [#allocation4], %s296_s23 }
 0x12c   : > { %p410_p8 = pneg %p409_p0 }
 0x12e   : > { %562 = dma.done.wait (%p410_p8), %s297_s30, 128  }
 0x12f   : > { %564 = vsyncadd (%p410_p8), %s297_s30, 4294967168  ;;  %p18_p10 = scmp.ge.s32.totalorder %s624_s15, 4   ;;  %s782_s9 = smov %s571_s10 }
 0x130   : > { %s783_s10 = smov %s575_s11  ;;  %s784_s11 = smov %s636_s18 }
 0x131   : > { %s785_s12 = smov %s624_s15  ;;  %20 = sbr.rel (!%p18_p10) target bundleno = 9 (0x9), region = 86 }
 0x136   :  { %303 = vsyncpa [#allocation3], 1 }
 0x137   :  { %305 = vsyncpa [#allocation3 + $0x1], 1 }
 0x138   :  { %306 = vsyncpa [#allocation6], 1 }
 0x139   :  { %308 = vsyncpa [#allocation6 + $0x1], 1 }
 0x13a   :  { %309 = vsyncpa [#allocation4], 1 }
 0x13b   :  { %311 = vsyncpa [#allocation4 + $0x1], 1 }

</bundles_post_ra>
